<compile_context>
chip_gen: v6e
topology: v6e:2x2x1
jax: 0.10.0
libtpu: 0.0.40
codegen_flags: <defaults>
</compile_context>

<pallas_src>
import jax
import jax.numpy as jnp
import numpy as np
from jax import lax
from jax.experimental import pallas as pl
from jax.experimental.pallas import tpu as pltpu


def rbert_attn_kernel(enc_ref,                 # VMEM [TB, S, H] (f32 or bf16)
                      pos_ref,                 # VMEM [TB, 2]    i32  (start, end)
                      watt_ref,                # VMEM [1, H]     f32
                      w0t_ref, b0_ref,         # VMEM [H, H] (enc dtype), [1, H] f32
                      w1t_ref, b1_ref,         # VMEM [H, H] (enc dtype), [1, H] f32
                      o0_ref, o1_ref):         # VMEM [TB, H], [TB, H]
    enc = enc_ref[...]                          # [TB, S, H] native dtype
    TB, S, H = enc.shape
    encf = enc.astype(jnp.float32)              # f32 for softmax math (no-op if f32)

    pos = pos_ref[...]                          # [TB, 2] int32
    start = pos[:, 0:1]                         # [TB, 1]
    end = pos[:, 1:2]                           # [TB, 1]

    # --- span attention logits, lane-dense [TB, S], f32 statistics ---
    # b_att is intentionally omitted: softmax(x + c) == softmax(x).
    # NOTE(v7x): if the VPU mul + XLU lane-reduce ever becomes the critical
    # slot (HBM ~3.2 TB/s), this dot can be offloaded to the otherwise-idle MXU.
    watt = watt_ref[...].reshape(1, 1, H)                       # [1, 1, H] f32
    logits = jnp.sum(encf * watt, axis=-1)                      # [TB, S] f32

    idx = lax.broadcasted_iota(jnp.int32, (TB, S), 1)           # position index
    in_span = (idx >= start) & (idx < end)                      # [TB, S]

    neg_big = jnp.float32(-1e30)
    masked = jnp.where(in_span, logits, neg_big)
    m = jnp.max(masked, axis=-1, keepdims=True)                 # [TB, 1]
    e = jnp.where(in_span, jnp.exp(masked - m), jnp.float32(0.0))
    denom = jnp.sum(e, axis=-1, keepdims=True)                  # [TB, 1]
    denom = jnp.where(denom > 0, denom, jnp.float32(1.0))       # guard empty spans
    weights = e / denom                                         # [TB, S], 0 outside span

    # --- weighted span pooling and CLS token (f32) ---
    h1 = jnp.sum(encf * weights[:, :, None], axis=1)            # [TB, H] f32
    h0 = encf[:, 0, :]                                          # [TB, H] f32

    # --- heads: (Dropout = id) -> Tanh -> Linear, batched MXU matmuls ---
    wdt = w0t_ref.dtype
    h0a = jnp.tanh(h0).astype(wdt)
    h1a = jnp.tanh(h1).astype(wdt)
    h0o = jnp.dot(h0a, w0t_ref[...], preferred_element_type=jnp.float32) + b0_ref[...]
    h1o = jnp.dot(h1a, w1t_ref[...], preferred_element_type=jnp.float32) + b1_ref[...]

    # Two lane-dense, unmasked full-block stores (valid for any H).
    o0_ref[...] = h0o.astype(o0_ref.dtype)
    o1_ref[...] = h1o.astype(o1_ref.dtype)


def _derive_batch_tile(B, S, H, enc_item, w_item, vmem_limit_bytes, block_b):
    """Largest TB (multiple of 8) whose working set fits the VMEM budget."""
    budget = int(0.75 * vmem_limit_bytes)
    fixed = (2 * (H * H * w_item) * 2     # W0^T, W1^T, counted double-buffered (worst case)
             + 3 * (H * 4) * 2            # watt, b0, b1
             + (1 << 16))                 # slack
    per_row = (2 * S * H * enc_item       # double-buffered encoded slab
               + 2 * S * H * 4            # f32 cast + elementwise-product temporaries
               + 8 * S * 4                # [TB, S] f32/bool intermediates
               + 2 * 2 * H * 4            # double-buffered o0/o1 blocks
               + 2 * 2 * 4)               # pos block
    tb = (budget - fixed) // per_row
    tb = max(8, (int(tb) // 8) * 8)
    tb = min(tb, max(8, int(block_b)))
    # Never exceed the (8-rounded) batch.
    tb = min(tb, -(-B // 8) * 8)
    # Give the "parallel" batch axis >= 2 grid steps when possible so it can
    # shard across the two TensorCores on v7x (negligible cost elsewhere).
    if B > 8:
        half8 = -(-((B + 1) // 2) // 8) * 8
        tb = min(tb, half8)
    return max(8, tb)


def rbert_encoder_attention(encoded, pos, params, block_b=256, vmem_limit_bytes=None):
    """encoded: [B, S, H] (f32 or bf16), pos: [B, 2] int -> [B, 2H] (encoded dtype).

    block_b caps the batch tile; the actual tile is derived from the VMEM budget
    (half the physical VMEM, capped at 64 MiB), so realistic BERT shapes
    (S=512, H=768/1024) fit on every generation including v7x.
    """
    B, S, H = encoded.shape
    w_att, b_att, w0, b0, w1, b1 = params
    del b_att  # softmax is shift-invariant; the scalar bias cancels exactly.

    enc = jnp.asarray(encoded)
    if enc.dtype not in (np.dtype('float32'), np.dtype(jnp.bfloat16)):
        enc = enc.astype(jnp.float32)          # don't force-upcast bf16 inputs
    cdt = enc.dtype
    pos_i = jnp.asarray(pos, jnp.int32)

    # Tiny-batch guard: pad to 8 rows (sublane granularity). For B >= 8 the
    # ragged last tile is handled by Pallas partial blocks - no full-tensor pad.
    if B < 8:
        padn = 8 - B
        enc = jnp.pad(enc, ((0, padn), (0, 0), (0, 0)))
        pos_i = jnp.concatenate(
            [pos_i, jnp.tile(jnp.array([[0, 1]], jnp.int32), (padn, 1))], axis=0)
        Bp = 8
    else:
        Bp = B

    # Softmax statistics stay in f32 regardless of the activation dtype.
    watt = jnp.asarray(w_att, jnp.float32).reshape(1, H)
    w0t = jnp.asarray(w0).astype(cdt).T        # [H_in, H_out] for x @ W^T, MXU-native dtype
    w1t = jnp.asarray(w1).astype(cdt).T
    b0r = jnp.asarray(b0, jnp.float32).reshape(1, H)
    b1r = jnp.asarray(b1, jnp.float32).reshape(1, H)

    # Per-generation VMEM budget: half of physical, capped at 64 MiB
    # (=> 64 MiB on v5e/v6e, 32 MiB on v7x).
    if vmem_limit_bytes is None:
        try:
            phys = int(pltpu.get_tpu_info().vmem_capacity_bytes)
        except Exception:
            phys = 128 * 1024 * 1024
        vmem_limit_bytes = min(max(phys // 2, 16 * 1024 * 1024), 64 * 1024 * 1024)
    vmem_limit_bytes = int(vmem_limit_bytes)

    tb = _derive_batch_tile(Bp, S, H, cdt.itemsize, cdt.itemsize,
                            vmem_limit_bytes, block_b)
    num_blocks = -(-Bp // tb)

    out0, out1 = pl.pallas_call(
        rbert_attn_kernel,
        out_shape=(jax.ShapeDtypeStruct((Bp, H), cdt),
                   jax.ShapeDtypeStruct((Bp, H), cdt)),
        grid=(num_blocks,),
        in_specs=[
            pl.BlockSpec((tb, S, H), lambda b: (b, 0, 0)),   # encoded slab
            pl.BlockSpec((tb, 2),    lambda b: (b, 0)),      # (start, end) per row
            pl.BlockSpec((1, H),     lambda b: (0, 0)),      # attention weight (f32)
            pl.BlockSpec((H, H),     lambda b: (0, 0)),      # W0^T (constant index -> resident)
            pl.BlockSpec((1, H),     lambda b: (0, 0)),      # b0
            pl.BlockSpec((H, H),     lambda b: (0, 0)),      # W1^T
            pl.BlockSpec((1, H),     lambda b: (0, 0)),      # b1
        ],
        out_specs=(pl.BlockSpec((tb, H), lambda b: (b, 0)),
                   pl.BlockSpec((tb, H), lambda b: (b, 0))),
        compiler_params=pltpu.CompilerParams(
            dimension_semantics=("parallel",),               # no cross-batch carry
            vmem_limit_bytes=vmem_limit_bytes),
    )(enc, pos_i, watt, w0t, b0r, w1t, b1r)

    # Cheap [B, 2H] concat (output traffic << encoded traffic); rows beyond B
    # (tiny-batch pad only) are sliced off.
    return jnp.concatenate([out0, out1], axis=1)[:B]


def reference(encoded, pos, params):
    """Plain-JAX replica of the PyTorch forward (eval mode)."""
    w_att, b_att, w0, b0, w1, b1 = params
    B = encoded.shape[0]
    h0 = encoded[:, 0]
    h1_rows = []
    for i in range(B):
        s, e = int(pos[i, 0]), int(pos[i, 1])
        span = encoded[i, s:e]
        logits = span @ w_att.T + b_att            # [L, 1]
        w = jax.nn.softmax(logits, axis=0)
        h1_rows.append(jnp.sum(span * w, axis=0))
    h1 = jnp.stack(h1_rows, axis=0)
    h0o = jnp.tanh(h0) @ w0.T + b0
    h1o = jnp.tanh(h1) @ w1.T + b1
    return jnp.concatenate([h0o, h1o], axis=1)


if __name__ == "__main__":
    B, S, H = 2, 8, 32

    key = jax.random.PRNGKey(0)
    k_enc, k_wa, k_ba, k_w0, k_b0, k_w1, k_b1 = jax.random.split(key, 7)

    encoded = jax.random.normal(k_enc, (B, S, H), dtype=jnp.float32)
    pos = jnp.array([[2, 6], [1, 5]], dtype=jnp.int32)   # [B, 2] (start, end)

    # nn.Linear-style uniform init with bound 1/sqrt(fan_in).
    bound = 1.0 / np.sqrt(H)
    w_att = jax.random.uniform(k_wa, (1, H), jnp.float32, -bound, bound)
    b_att = jax.random.uniform(k_ba, (1,),   jnp.float32, -bound, bound)
    w0    = jax.random.uniform(k_w0, (H, H), jnp.float32, -bound, bound)
    b0    = jax.random.uniform(k_b0, (H,),   jnp.float32, -bound, bound)
    w1    = jax.random.uniform(k_w1, (H, H), jnp.float32, -bound, bound)
    b1    = jax.random.uniform(k_b1, (H,),   jnp.float32, -bound, bound)
    params = (w_att, b_att, w0, b0, w1, b1)

    out = rbert_encoder_attention(encoded, pos, params)
    out = jax.block_until_ready(out)

    ref = reference(encoded, pos, params)
    assert out.shape == (B, 2 * H), out.shape
    np.testing.assert_allclose(np.asarray(out), np.asarray(ref), rtol=1e-5, atol=1e-5)

    print("KERNEL_OK")
</pallas_src>

<mosaic_0001>
module attributes {stable_mosaic.version = 11 : i64} {
  func.func @rbert_attn_kernel(%arg0: i32, %arg1: memref<8x8x32xf32, #tpu.memory_space<vmem>>, %arg2: memref<8x2xi32, #tpu.memory_space<vmem>>, %arg3: memref<1x32xf32, #tpu.memory_space<vmem>>, %arg4: memref<32x32xf32, #tpu.memory_space<vmem>>, %arg5: memref<1x32xf32, #tpu.memory_space<vmem>>, %arg6: memref<32x32xf32, #tpu.memory_space<vmem>>, %arg7: memref<1x32xf32, #tpu.memory_space<vmem>>, %arg8: memref<8x32xf32, #tpu.memory_space<vmem>>, %arg9: memref<8x32xf32, #tpu.memory_space<vmem>>) attributes {dimension_semantics = [#tpu.dimension_semantics<parallel>], iteration_bounds = array<i64: 1>, scalar_prefetch = 0 : i64, scratch_operands = 0 : i64, tpu.core_type = #tpu.core_type<tc>, window_params = [{transform_indices = @transform_0, window_bounds = array<i64: 8, 8, 32>}, {transform_indices = @transform_1, window_bounds = array<i64: 8, 2>}, {pipeline_mode = #tpu.pipeline_mode<synchronous>, transform_indices = @transform_2, window_bounds = array<i64: 1, 32>}, {pipeline_mode = #tpu.pipeline_mode<synchronous>, transform_indices = @transform_3, window_bounds = array<i64: 32, 32>}, {pipeline_mode = #tpu.pipeline_mode<synchronous>, transform_indices = @transform_4, window_bounds = array<i64: 1, 32>}, {pipeline_mode = #tpu.pipeline_mode<synchronous>, transform_indices = @transform_5, window_bounds = array<i64: 32, 32>}, {pipeline_mode = #tpu.pipeline_mode<synchronous>, transform_indices = @transform_6, window_bounds = array<i64: 1, 32>}, {transform_indices = @transform_7, window_bounds = array<i64: 8, 32>}, {transform_indices = @transform_8, window_bounds = array<i64: 8, 32>}]} {
    %c0 = arith.constant 0 : index
    %c0_0 = arith.constant 0 : index
    %c0_1 = arith.constant 0 : index
    %0 = vector.load %arg1[%c0, %c0_0, %c0_1] : memref<8x8x32xf32, #tpu.memory_space<vmem>>, vector<8x8x32xf32>
    %c0_2 = arith.constant 0 : index
    %c0_3 = arith.constant 0 : index
    %1 = vector.load %arg2[%c0_2, %c0_3] : memref<8x2xi32, #tpu.memory_space<vmem>>, vector<8x2xi32>
    %2 = vector.extract_strided_slice %1 {offsets = [0, 0], sizes = [8, 1], strides = [1, 1]} : vector<8x2xi32> to vector<8x1xi32>
    %3 = vector.extract_strided_slice %1 {offsets = [0, 1], sizes = [8, 1], strides = [1, 1]} : vector<8x2xi32> to vector<8x1xi32>
    %c0_4 = arith.constant 0 : index
    %c0_5 = arith.constant 0 : index
    %4 = vector.load %arg3[%c0_4, %c0_5] : memref<1x32xf32, #tpu.memory_space<vmem>>, vector<1x32xf32>
    %5 = vector.shape_cast %4 : vector<1x32xf32> to vector<1x1x32xf32>
    %6 = vector.broadcast %5 : vector<1x1x32xf32> to vector<8x8x32xf32>
    %7 = arith.mulf %0, %6 : vector<8x8x32xf32>
    %cst = arith.constant dense<0.000000e+00> : vector<8x8xf32>
    %8 = vector.multi_reduction <add>, %7, %cst [2] : vector<8x8x32xf32> to vector<8x8xf32>
    %9 = tpu.iota {dimensions = array<i32: 1>} : vector<8x8xi32>
    %10 = vector.broadcast %2 : vector<8x1xi32> to vector<8x8xi32>
    %11 = arith.cmpi sge, %9, %10 : vector<8x8xi32>
    %12 = vector.broadcast %3 : vector<8x1xi32> to vector<8x8xi32>
    %13 = arith.cmpi slt, %9, %12 : vector<8x8xi32>
    %14 = arith.andi %11, %13 : vector<8x8xi1>
    %cst_6 = arith.constant -1.000000e+30 : f32
    %15 = vector.broadcast %cst_6 : f32 to vector<8x8xf32>
    %16 = arith.select %14, %8, %15 : vector<8x8xi1>, vector<8x8xf32>
    %cst_7 = arith.constant dense<0xFF800000> : vector<8xf32>
    %17 = vector.multi_reduction <maximumf>, %16, %cst_7 [1] : vector<8x8xf32> to vector<8xf32>
    %18 = vector.shape_cast %17 : vector<8xf32> to vector<8x1xf32>
    %19 = vector.broadcast %18 : vector<8x1xf32> to vector<8x8xf32>
    %20 = arith.subf %16, %19 : vector<8x8xf32>
    %21 = math.exp %20 : vector<8x8xf32>
    %cst_8 = arith.constant 0.000000e+00 : f32
    %22 = vector.broadcast %cst_8 : f32 to vector<8x8xf32>
    %23 = arith.select %14, %21, %22 : vector<8x8xi1>, vector<8x8xf32>
    %cst_9 = arith.constant dense<0.000000e+00> : vector<8xf32>
    %24 = vector.multi_reduction <add>, %23, %cst_9 [1] : vector<8x8xf32> to vector<8xf32>
    %25 = vector.shape_cast %24 : vector<8xf32> to vector<8x1xf32>
    %cst_10 = arith.constant 0.000000e+00 : f32
    %26 = vector.broadcast %cst_10 : f32 to vector<8x1xf32>
    %27 = arith.cmpf ogt, %25, %26 : vector<8x1xf32>
    %cst_11 = arith.constant 1.000000e+00 : f32
    %28 = vector.broadcast %cst_11 : f32 to vector<8x1xf32>
    %29 = arith.select %27, %25, %28 : vector<8x1xi1>, vector<8x1xf32>
    %30 = vector.broadcast %29 : vector<8x1xf32> to vector<8x8xf32>
    %31 = arith.divf %23, %30 : vector<8x8xf32>
    %32 = vector.shape_cast %31 : vector<8x8xf32> to vector<8x8x1xf32>
    %33 = vector.broadcast %32 : vector<8x8x1xf32> to vector<8x8x32xf32>
    %34 = arith.mulf %0, %33 : vector<8x8x32xf32>
    %cst_12 = arith.constant dense<0.000000e+00> : vector<8x32xf32>
    %35 = vector.multi_reduction <add>, %34, %cst_12 [1] : vector<8x8x32xf32> to vector<8x32xf32>
    %36 = vector.extract_strided_slice %0 {offsets = [0, 0, 0], sizes = [8, 1, 32], strides = [1, 1, 1]} : vector<8x8x32xf32> to vector<8x1x32xf32>
    %37 = vector.shape_cast %36 : vector<8x1x32xf32> to vector<8x32xf32>
    %38 = math.tanh %37 : vector<8x32xf32>
    %39 = math.tanh %35 : vector<8x32xf32>
    %c0_13 = arith.constant 0 : index
    %c0_14 = arith.constant 0 : index
    %40 = vector.load %arg4[%c0_13, %c0_14] : memref<32x32xf32, #tpu.memory_space<vmem>>, vector<32x32xf32>
    %cst_15 = arith.constant dense<0.000000e+00> : vector<8x32xf32>
    %41 = tpu.matmul %38, %40, %cst_15 {dimension_numbers = #tpu.dot_dimension_numbers<[1], [0], [0], [1], [0, 0, 1, 1], [], []>} : vector<8x32xf32>, vector<32x32xf32>, vector<8x32xf32> -> vector<8x32xf32>
    %c0_16 = arith.constant 0 : index
    %c0_17 = arith.constant 0 : index
    %42 = vector.load %arg5[%c0_16, %c0_17] : memref<1x32xf32, #tpu.memory_space<vmem>>, vector<1x32xf32>
    %43 = vector.broadcast %42 : vector<1x32xf32> to vector<8x32xf32>
    %44 = arith.addf %41, %43 : vector<8x32xf32>
    %c0_18 = arith.constant 0 : index
    %c0_19 = arith.constant 0 : index
    %45 = vector.load %arg6[%c0_18, %c0_19] : memref<32x32xf32, #tpu.memory_space<vmem>>, vector<32x32xf32>
    %cst_20 = arith.constant dense<0.000000e+00> : vector<8x32xf32>
    %46 = tpu.matmul %39, %45, %cst_20 {dimension_numbers = #tpu.dot_dimension_numbers<[1], [0], [0], [1], [0, 0, 1, 1], [], []>} : vector<8x32xf32>, vector<32x32xf32>, vector<8x32xf32> -> vector<8x32xf32>
    %c0_21 = arith.constant 0 : index
    %c0_22 = arith.constant 0 : index
    %47 = vector.load %arg7[%c0_21, %c0_22] : memref<1x32xf32, #tpu.memory_space<vmem>>, vector<1x32xf32>
    %48 = vector.broadcast %47 : vector<1x32xf32> to vector<8x32xf32>
    %49 = arith.addf %46, %48 : vector<8x32xf32>
    %c0_23 = arith.constant 0 : index
    %c0_24 = arith.constant 0 : index
    %50 = vector.load %arg8[%c0_23, %c0_24] : memref<8x32xf32, #tpu.memory_space<vmem>>, vector<8x32xf32>
    tpu.vector_store %arg8[%c0_23, %c0_24], %44 {strides = array<i32>} : memref<8x32xf32, #tpu.memory_space<vmem>>, vector<8x32xf32>,
    %c0_25 = arith.constant 0 : index
    %c0_26 = arith.constant 0 : index
    %51 = vector.load %arg9[%c0_25, %c0_26] : memref<8x32xf32, #tpu.memory_space<vmem>>, vector<8x32xf32>
    tpu.vector_store %arg9[%c0_25, %c0_26], %49 {strides = array<i32>} : memref<8x32xf32, #tpu.memory_space<vmem>>, vector<8x32xf32>,
    return
  }
  func.func @transform_0(%arg0: i32) -> (i32, i32, i32) {
    %c0_i32 = arith.constant 0 : i32
    %c0_i32_0 = arith.constant 0 : i32
    %c0_i32_1 = arith.constant 0 : i32
    return %arg0, %c0_i32, %c0_i32_0 : i32, i32, i32
  }
  func.func @transform_1(%arg0: i32) -> (i32, i32) {
    %c0_i32 = arith.constant 0 : i32
    %c0_i32_0 = arith.constant 0 : i32
    return %arg0, %c0_i32 : i32, i32
  }
  func.func @transform_2(%arg0: i32) -> (i32, i32) {
    %c0_i32 = arith.constant 0 : i32
    %c0_i32_0 = arith.constant 0 : i32
    %c0_i32_1 = arith.constant 0 : i32
    return %c0_i32, %c0_i32_0 : i32, i32
  }
  func.func @transform_3(%arg0: i32) -> (i32, i32) {
    %c0_i32 = arith.constant 0 : i32
    %c0_i32_0 = arith.constant 0 : i32
    %c0_i32_1 = arith.constant 0 : i32
    return %c0_i32, %c0_i32_0 : i32, i32
  }
  func.func @transform_4(%arg0: i32) -> (i32, i32) {
    %c0_i32 = arith.constant 0 : i32
    %c0_i32_0 = arith.constant 0 : i32
    %c0_i32_1 = arith.constant 0 : i32
    return %c0_i32, %c0_i32_0 : i32, i32
  }
  func.func @transform_5(%arg0: i32) -> (i32, i32) {
    %c0_i32 = arith.constant 0 : i32
    %c0_i32_0 = arith.constant 0 : i32
    %c0_i32_1 = arith.constant 0 : i32
    return %c0_i32, %c0_i32_0 : i32, i32
  }
  func.func @transform_6(%arg0: i32) -> (i32, i32) {
    %c0_i32 = arith.constant 0 : i32
    %c0_i32_0 = arith.constant 0 : i32
    %c0_i32_1 = arith.constant 0 : i32
    return %c0_i32, %c0_i32_0 : i32, i32
  }
  func.func @transform_7(%arg0: i32) -> (i32, i32) {
    %c0_i32 = arith.constant 0 : i32
    %c0_i32_0 = arith.constant 0 : i32
    return %arg0, %c0_i32 : i32, i32
  }
  func.func @transform_8(%arg0: i32) -> (i32, i32) {
    %c0_i32 = arith.constant 0 : i32
    %c0_i32_0 = arith.constant 0 : i32
    return %arg0, %c0_i32 : i32, i32
  }
}

</mosaic_0001>

<bundles_post_ra>
// kernel: tpu_custom_call.1
= control target key start
LH: loop header
LB: loop body
LE: loop exit
PB: predicated region body
PF: predicated region fallthrough
CT: control target
= control target key end

     0   :  { %14 = vsyncpa [#allocation3], 0  ;;  %s943_s0 = inlined_call_operand.hbm [shape: f32[8,8,32], index: 0, kind: input, shape index: {}]   ;;  %s944_s1 = inlined_call_operand.vmem [shape: s32[8,2], index: 1, kind: input, shape index: {}]   ;;  %s945_s2 = inlined_call_operand.vmem [shape: f32[1,32], index: 2, kind: input, shape index: {}]   ;;  %s946_s3 = inlined_call_operand.hbm [shape: f32[32,32], index: 3, kind: input, shape index: {}]   ;;  %s947_s4 = inlined_call_operand.vmem [shape: f32[1,32], index: 4, kind: input, shape index: {}]   ;;  %s948_s5 = inlined_call_operand.hbm [shape: f32[32,32], index: 5, kind: input, shape index: {}]   ;;  %s949_s6 = inlined_call_operand.vmem [shape: f32[1,32], index: 6, kind: input, shape index: {}]   ;;  %s950_s7 = inlined_call_operand.hbm [shape: f32[8,32], index: 7, kind: output, shape index: {0}]   ;;  %s951_s8 = inlined_call_operand.hbm [shape: f32[8,32], index: 8, kind: output, shape index: {1}]  }
   0x1   :  { %15 = vsyncpa [#allocation6], 0 }
   0x2   :  { %16 = vsyncpa [#allocation4], 0 }
   0x3   :  { %17 = vsyncpa [#allocation10], 0  ;;  %s768_s27 = smov [#allocation5]   ;;  %s769_s29 = smov [#allocation2]  }
   0x4   :  { %s39_s28 = sshll.u32 %s768_s27, 4  ;;  %s23_s30 = sshll.u32 %s769_s29, 4  ;;  %s40_s28 = int_to_ptr.vmem [resolvable:$true] %s39_s28  ;;  %s24_s30 = int_to_ptr.vmem [resolvable:$true] %s23_s30 }
   0x5   :  { %s668_s9 = scalar_lea.vmem %s40_s28, 512  ;;  %p673_p1 = scmp.lt.s32.totalorder %s40_s28, %s40_s28 }
   0x6   :  { %p669_p0 = scmp.ne.s32.totalorder %s40_s28, %s668_s9  ;;  %p674_p2 = scmp.lt.s32.totalorder %s668_s9, %s668_s9 }
   0x8   :  { %p675_p3 = por %p674_p2, %p673_p1 }
   0xa   :  { %p676_p4 = pnand %p675_p3, %p669_p0 }
   0xc   :  { %679 = shalt.err (!%p676_p4)
}
   0xd   :  { %s770_s10 = smov 128   ;;  %s771_s11 = smov 8  }
   0xe   :  { %45 = dma.hbm_to_vmem [thread:$0]  %s946_s3, 512, %s40_s28, [#allocation6], %s770_s10, %s770_s10, %s771_s11  }
   0xf   :  { %s688_s14 = scalar_lea.vmem %s24_s30, 1024  ;;  %p693_p6 = scmp.lt.s32.totalorder %s24_s30, %s24_s30 }
  0x10   :  { %p689_p5 = scmp.ne.s32.totalorder %s24_s30, %s688_s14  ;;  %p694_p7 = scmp.lt.s32.totalorder %s688_s14, %s688_s14 }
  0x12   :  { %p695_p8 = por %p694_p7, %p693_p6 }
  0x14   :  { %p696_p9 = pnand %p695_p8, %p689_p5 }
  0x16   :  { %699 = shalt.err (!%p696_p9)
}
  0x17   :  { %29 = dma.hbm_to_vmem [thread:$0]  %s943_s0, 1024, %s24_s30, [#allocation3], %s770_s10, %s770_s10, %s771_s11  }
  0x18   :  { %s772_s17 = smov [#allocation7]  }
  0x19   :  { %s53_s18 = sshll.u32 %s772_s17, 4  ;;  %s54_s18 = int_to_ptr.vmem [resolvable:$true] %s53_s18 }
  0x1a   :  { %s708_s19 = scalar_lea.vmem %s54_s18, 512  ;;  %p713_p11 = scmp.lt.s32.totalorder %s54_s18, %s54_s18 }
  0x1b   :  { %p709_p10 = scmp.ne.s32.totalorder %s54_s18, %s708_s19  ;;  %p714_p12 = scmp.lt.s32.totalorder %s708_s19, %s708_s19 }
  0x1d   :  { %p715_p13 = por %p714_p12, %p713_p11 }
  0x1f   :  { %p716_p0 = pnand %p715_p13, %p709_p10 }
  0x21   :  { %719 = shalt.err (!%p716_p0)
}
  0x22   :  { %59 = dma.hbm_to_vmem [thread:$0]  %s948_s5, 512, %s54_s18, [#allocation6], %s770_s10, %s770_s10, %s771_s11  }
  0x23   :  { %760 = dma.done.wait [#allocation3], 1024  }
  0x24   :  { %761 = vsyncadd [#allocation3], 4294966272 }
  0x25   :  { %762 = dma.done.wait [#allocation6], 1024  }
  0x26   :  { %763 = vsyncadd [#allocation6], 4294966272  ;;  %v773_v0 = vmov 1   ;;  %v774_v1 = vmov 0   ;;  %v833_v2 = vld [vmem:[#allocation2] sm:$0xff]  ;;  %vm95_vm0 = vcmask 261120   ;;  %v120_v28 = vlaneseq }
  0x27   :  { %622 = vset.pattern.permute.xlu1 %v773_v0  ;;  %621 = vset.pattern.permute.xlu0 %v774_v1  ;;  %v573_v3 = vld [vmem:[%s945_s2] ss:$0 sm:$0xff]  ;;  %v838_v4 = vld [vmem:[#allocation2 + $0x10] sm:$0xff]  ;;  %v842_v7 = vld [vmem:[#allocation2 + $0x8] sm:$0xff]  ;;  %vm171_vm1 = vcmask 1041409   ;;  %vm173_vm2 = vcmask 1042434  }
  0x28   :  { %v87_v5 = vmul.f32 %v573_v3, %v833_v2  ;;  %v89_v6 = vmul.f32 %v573_v3, %v838_v4  ;;  %v844_v8 = vld [vmem:[#allocation2 + $0x18] sm:$0xff]  ;;  %v88_v9 = vmul.f32 %v573_v3, %v842_v7  ;;  %v848_v11 = vld [vmem:[#allocation2 + $0x20] sm:$0xff]  ;;  %v850_v12 = vld [vmem:[#allocation2 + $0x28] sm:$0xff]  ;;  %v121_v29 = vand.u32 127, %v120_v28  ;;  %s777_s23 = smov [#allocation8]  }
  0x29   :  { %v90_v10 = vmul.f32 %v573_v3, %v844_v8  ;;  %v91_v17 = vmul.f32 %v573_v3, %v848_v11  ;;  %v92_v18 = vmul.f32 %v573_v3, %v850_v12  ;;  %v858_v19 = vld [vmem:[#allocation2 + $0x30] sm:$0xff]  ;;  %v860_v20 = vld [vmem:[#allocation2 + $0x38] sm:$0xff]  ;;  %v79_v27 = vld [vmem:[%s944_s1] sm:$0xff]  ;;  %v871_v30 = vshrl.u32 %v120_v28, 7  ;;  %s549_s24 = sshll.u32 %s777_s23, 4  ;;  %s550_s24 = int_to_ptr.vmem [resolvable:$true] %s549_s24 }
  0x2a   :  { %v96_v13 = vsel %vm95_vm0, %v87_v5, 0.0  ;;  %v102_v14 = vsel %vm95_vm0, %v89_v6, 0.0  ;;  %v99_v15 = vsel %vm95_vm0, %v88_v9, 0.0  ;;  %v93_v23 = vmul.f32 %v573_v3, %v858_v19  ;;  %s720_s25 = scalar_lea.vmem %s550_s24, 128  ;;  %p725_p2 = scmp.lt.s32.totalorder %s550_s24, %s550_s24 }
  0x2b   :  { %97 = vadd.xlane.f32.xlu0 %v96_v13  ;;  %103 = vadd.xlane.f32.xlu1 %v102_v14  ;;  %v105_v16 = vsel %vm95_vm0, %v90_v10, 0.0  ;;  %v108_v21 = vsel %vm95_vm0, %v91_v17, 0.0  ;;  %v111_v22 = vsel %vm95_vm0, %v92_v18, 0.0  ;;  %v94_v24 = vmul.f32 %v573_v3, %v860_v20  ;;  %p721_p1 = scmp.ne.s32.totalorder %s550_s24, %s720_s25  ;;  %p726_p3 = scmp.lt.s32.totalorder %s720_s25, %s720_s25 }
  0x2c   :  { %v114_v25 = vsel %vm95_vm0, %v93_v23, 0.0  ;;  %v141_v33 = vsub.s32 %v121_v29, %v871_v30  ;;  %vm175_vm3 = vcmask 1043459   ;;  %vm177_vm4 = vcmask 1044484  }
  0x2d   :  { %v117_v26 = vsel %vm95_vm0, %v94_v24, 0.0  ;;  %vm179_vm5 = vcmask 1045509   ;;  %vm181_vm6 = vcmask 1046534   ;;  %vm183_vm8 = vcmask 1047559   ;;  %p727_p4 = por %p726_p3, %p725_p2 }
  0x2e   :  { %vm187_vm10 = vcmask 64512   ;;  %v225_v5 = vsub.s32 3, %v871_v30  ;;  %v204_v6 = vsub.s32 0, %v871_v30  ;;  %v218_v17 = vsub.s32 2, %v871_v30 }
  0x2f   :  { %100 = vadd.xlane.f32.xlu0 %v99_v15  ;;  %106 = vadd.xlane.f32.xlu1 %v105_v16  ;;  %v211_v15 = vsub.s32 1, %v871_v30  ;;  %vm776_vm13 = vmmov 0   ;;  %p728_p5 = pnand %p727_p4, %p721_p1 }
  0x33   :  { %109 = vadd.xlane.f32.xlu0 %v108_v21  ;;  %112 = vadd.xlane.f32.xlu1 %v111_v22  ;;  %v232_v21 = vsub.s32 4, %v871_v30 }
  0x37   :  { %115 = vadd.xlane.f32.xlu0 %v114_v25  ;;  %118 = vadd.xlane.f32.xlu1 %v117_v26  ;;  %v239_v26 = vsub.s32 5, %v871_v30 }
  0x48   :  { %127 = vperm.xlu1 %622, %v79_v27  }
  0x4d   :  { %123 = vperm.xlu0 %621, %v79_v27  }
  0x51   :  { %623 = vset.pattern.permute.xlu0 %v773_v0 }
  0xb4   :  { %v98_v31 = vpop.xlane.xlu0 %97  ;;  %v104_v32 = vpop.xlane.xlu1 %103 }
  0xb5   :  { %v142_v36 = vrot.slane %v98_v31, %v141_v33  ;;  %v150_v37 = vrot.slane %v104_v32, %v141_v33 }
  0xb8   :  { %v101_v34 = vpop.xlane.xlu0 %100  ;;  %v107_v35 = vpop.xlane.xlu1 %106 }
  0xb9   :  { %v146_v38 = vrot.slane %v101_v34, %v141_v33  ;;  %v154_v40 = vrot.slane %v107_v35, %v141_v33 }
  0xbb   :  { %v172_v39 = vsel %vm171_vm1, %v146_v38, %v142_v36  ;;  %v253_v38 = vsub.s32 7, %v871_v30 }
  0xbc   :  { %v110_v41 = vpop.xlane.xlu0 %109  ;;  %v113_v42 = vpop.xlane.xlu1 %112  ;;  %v174_v43 = vsel %vm173_vm2, %v150_v37, %v172_v39 }
  0xbd   :  { %v158_v44 = vrot.slane %v110_v41, %v141_v33  ;;  %v176_v45 = vsel %vm175_vm3, %v154_v40, %v174_v43  ;;  %v162_v48 = vrot.slane %v113_v42, %v141_v33 }
  0xbf   :  { %v178_v49 = vsel %vm177_vm4, %v158_v44, %v176_v45 }
  0xc0   :  { %v116_v46 = vpop.xlane.xlu0 %115  ;;  %v119_v47 = vpop.xlane.xlu1 %118  ;;  %v180_v52 = vsel %vm179_vm5, %v162_v48, %v178_v49  ;;  %v446_v48 = vld [vmem:[#allocation7 + $0x18] sm:$0xff] }
  0xc1   :  { %v166_v50 = vrot.slane %v116_v46, %v141_v33  ;;  %v170_v53 = vrot.slane %v119_v47, %v141_v33  ;;  %v246_v33 = vsub.s32 6, %v871_v30  ;;  %v341_v47 = vld [vmem:[#allocation5 + $0x18] sm:$0xff]  ;;  %v340_v30 = vld [vmem:[#allocation5 + $0x10] sm:$0xff] }
  0xc3   :  { %v182_v54 = vsel %vm181_vm6, %v166_v50, %v180_v52  ;;  %v445_v52 = vld [vmem:[#allocation7 + $0x10] sm:$0xff] }
  0xc4   :  { %v128_v51 = vpop.permute.xlu1 %127  ;;  %v184_v56 = vsel %vm183_vm8, %v170_v53, %v182_v54  ;;  %v339_v54 = vld [vmem:[#allocation5 + $0x8] sm:$0xff] }
  0xc5   :  { %vm129_vm7 = vcmp.lt.s32.totalorder %v121_v29, %v128_v51  ;;  %v775_v51 = vmov 0.0  }
  0xc6   :  { %588 = vmatprep.subr.mxu0 %v775_v51  ;;  %599 = vmatprep.subr.mxu1 %v775_v51 }
  0xc7   :  { %589 = vmatpush3.msra.mxu0 %v341_v47  ;;  %600 = vmatpush3.msra.mxu1 %v446_v48 }
  0xc8   :  { %v124_v55 = vpop.permute.xlu0 %123  ;;  %590 = vmatprep.subr.mxu0 %v775_v51  ;;  %601 = vmatprep.subr.mxu1 %v775_v51 }
  0xc9   :  { %vm125_vm9 = vcmp.ge.s32.totalorder %v121_v29, %v124_v55  ;;  %591 = vmatpush3.msra.mxu0 %v340_v30  ;;  %602 = vmatpush3.msra.mxu1 %v445_v52 }
  0xca   :  { %vm130_vm11 = vmand %vm125_vm9, %vm129_vm7  ;;  %592 = vmatprep.subr.mxu0 %v775_v51  ;;  %603 = vmatprep.subr.mxu1 %v775_v51 }
  0xcb   :  { %v186_v57 = vsel %vm130_vm11, %v184_v56, -1e+30  ;;  %v444_v56 = vld [vmem:[#allocation7 + $0x8] sm:$0xff]  ;;  %593 = vmatpush3.msra.mxu0 %v339_v54  ;;  %596 = vmatprep.mubr.msk.f32.mxu0 %vm776_vm13, %v775_v51 }
  0xcc   :  { %v188_v58 = vsel %vm187_vm10, %v186_v57, -inf  ;;  %594 = vmatprep.subr.mxu0 %v775_v51  ;;  %604 = vmatpush3.msra.mxu1 %v444_v56 }
  0xcd   :  { %189 = vmax.xlane.f32.xlu1 %v188_v58  ;;  %605 = vmatprep.subr.mxu1 %v775_v51 }
  0xce   :  { %607 = vmatprep.mubr.msk.f32.mxu1 %vm776_vm13, %v775_v51 }
 0x156   :  { %v190_v59 = vpop.xlane.xlu1 %189 }
 0x157   :  { %v191_v60 = vsub.f32 %v186_v57, %v190_v59  ;;  %v338_v57 = vld [vmem:[#allocation5] sm:$0xff] }
 0x158   :  { %v443_v59 = vld [vmem:[#allocation7] sm:$0xff]  ;;  %595 = vmatpush3.msra.mxu0 %v338_v57 }
 0x159   :  { %v192_v61 = vmul.f32 1.442695, %v191_v60  ;;  %606 = vmatpush3.msra.mxu1 %v443_v59 }
 0x15b   :  { %624 = vpow2.f32 %v192_v61 }
 0x168   :  { %v625_v62 = vpop.eup %624 }
 0x169   :  { %v194_v63 = vsel %vm130_vm11, %v625_v62, 0.0 }
 0x16a   :  { %v195_v0 = vsel %vm187_vm10, %v194_v63, 0.0 }
 0x16b   :  { %196 = vadd.xlane.f32.xlu0 %v195_v0 }
 0x1f4   :  { %v197_v1 = vpop.xlane.xlu0 %196 }
 0x1f5   :  { %vm198_vm12 = vcmp.gt.f32.partialorder %v197_v1, 0.0 }
 0x1f6   :  { %v199_v3 = vsel %vm198_vm12, %v197_v1, 1.0 }
 0x1f7   :  { %626 = vrcp.f32 %v199_v3 }
 0x1f8   :  { %628 = vtanh.f32 %v842_v7 }
 0x1f9   :  { %630 = vtanh.f32 %v838_v4 }
 0x1fa   :  { %632 = vtanh.f32 %v833_v2 }
 0x1fb   :  { %634 = vtanh.f32 %v844_v8 }
 0x1fc   :  { %636 = vtanh.f32 %v848_v11 }
 0x1fd   :  { %638 = vtanh.f32 %v850_v12 }
 0x1fe   :  { %640 = vtanh.f32 %v858_v19 }
 0x1ff   :  { %642 = vtanh.f32 %v860_v20 }
 0x204   :  { %v627_v9 = vpop.eup %626 }
 0x205   :  { %v201_v10 = vmul.f32 %v627_v9, %v194_v63  ;;  %v629_v22 = vpop.eup %628 }
 0x206   :  { %v631_v23 = vpop.eup %630  ;;  %v357_v24 = vrot.slane %v629_v22, 7 }
 0x207   :  { %v226_v13 = vrot.slane %v201_v10, %v225_v5  ;;  %v205_v14 = vrot.slane %v201_v10, %v204_v6  ;;  %v212_v16 = vrot.slane %v201_v10, %v211_v15  ;;  %v219_v18 = vrot.slane %v201_v10, %v218_v17  ;;  %v633_v27 = vpop.eup %632 }
 0x208   :  { %v233_v25 = vrot.slane %v201_v10, %v232_v21  ;;  %v635_v28 = vpop.eup %634  ;;  %v359_v29 = vrot.slane %v631_v23, 6  ;;  %v358_v31 = vsel %vm171_vm1, %v357_v24, %v633_v27  ;;  %v240_v32 = vrot.slane %v201_v10, %v239_v26 }
 0x209   :  { %228 = vbcast.lane.b32.xlu0 %v226_v13, 256  ;;  %207 = vbcast.lane.b32.xlu1 %v205_v14, 256  ;;  %v637_v34 = vpop.eup %636  ;;  %v361_v35 = vrot.slane %v635_v28, 5  ;;  %v247_v37 = vrot.slane %v201_v10, %v246_v33  ;;  %v254_v43 = vrot.slane %v201_v10, %v253_v38 }
 0x20a   :  { %v360_v36 = vsel %vm173_vm2, %v359_v29, %v358_v31  ;;  %v639_v39 = vpop.eup %638  ;;  %v363_v40 = vrot.slane %v637_v34, 4 }
 0x20b   :  { %v362_v41 = vsel %vm175_vm3, %v361_v35, %v360_v36  ;;  %v365_v42 = vrot.slane %v639_v39, 3  ;;  %v641_v44 = vpop.eup %640 }
 0x20c   :  { %v364_v45 = vsel %vm177_vm4, %v363_v40, %v362_v41  ;;  %v643_v46 = vpop.eup %642  ;;  %v367_v50 = vrot.slane %v641_v44, 2 }
 0x20d   :  { %214 = vbcast.lane.b32.xlu1 %v212_v16, 256  ;;  %v366_v49 = vsel %vm179_vm5, %v365_v42, %v364_v45  ;;  %v369_v53 = vrot.slane %v643_v46, 1 }
 0x20e   :  { %v368_v55 = vsel %vm181_vm6, %v367_v50, %v366_v49 }
 0x20f   :  { %v370_v58 = vsel %vm183_vm8, %v369_v53, %v368_v55 }
 0x210   :  { %597 = vmatmul.mubr.msk.f32.vlgmr.msra.gmra.mxu0 %vm95_vm0, %v370_v58 }
 0x211   :  { %221 = vbcast.lane.b32.xlu1 %v219_v18, 256 }
 0x215   :  { %235 = vbcast.lane.b32.xlu1 %v233_v25, 256 }
 0x219   :  { %242 = vbcast.lane.b32.xlu1 %v240_v32, 256 }
 0x21d   :  { %249 = vbcast.lane.b32.xlu1 %v247_v37, 256 }
 0x221   :  { %256 = vbcast.lane.b32.xlu1 %v254_v43, 256 }
 0x27b   :  { %v229_v60 = vpop.permute.xlu0 %228  ;;  %v208_v61 = vpop.permute.xlu1 %207 }
 0x27c   :  { %v258_v62 = vmul.f32 %v208_v61, %v833_v2  ;;  %v261_v63 = vmul.f32 %v229_v60, %v844_v8 }
 0x27e   :  { %v266_v1 = vsel %vm95_vm0, %v258_v62, 0.0  ;;  %v287_v5 = vsel %vm95_vm0, %v261_v63, 0.0 }
 0x27f   :  { %v215_v0 = vpop.permute.xlu1 %214  ;;  %v267_v9 = vrot.slane %v266_v1, 4  ;;  %v288_v15 = vrot.slane %v287_v5, 4 }
 0x280   :  { %v259_v3 = vmul.f32 %v215_v0, %v842_v7 }
 0x281   :  { %v268_v17 = vadd.f32 %v267_v9, %v266_v1  ;;  %v289_v22 = vadd.f32 %v288_v15, %v287_v5 }
 0x282   :  { %v273_v6 = vsel %vm95_vm0, %v259_v3, 0.0 }
 0x283   :  { %v274_v10 = vrot.slane %v273_v6, 4  ;;  %v222_v13 = vpop.permute.xlu1 %221  ;;  %v269_v25 = vrot.slane %v268_v17, 2  ;;  %v290_v29 = vrot.slane %v289_v22, 2 }
 0x284   :  { %v260_v14 = vmul.f32 %v222_v13, %v838_v4 }
 0x285   :  { %v275_v16 = vadd.f32 %v274_v10, %v273_v6  ;;  %v270_v35 = vadd.f32 %v269_v25, %v268_v17  ;;  %v291_v39 = vadd.f32 %v290_v29, %v289_v22 }
 0x286   :  { %v280_v2 = vsel %vm95_vm0, %v260_v14, 0.0 }
 0x287   :  { %v281_v8 = vrot.slane %v280_v2, 4  ;;  %v236_v18 = vpop.permute.xlu1 %235  ;;  %v276_v7 = vrot.slane %v275_v16, 2  ;;  %v292_v49 = vrot.slane %v291_v39, 1 }
 0x288   :  { %v262_v21 = vmul.f32 %v236_v18, %v848_v11 }
 0x289   :  { %v282_v23 = vadd.f32 %v281_v8, %v280_v2  ;;  %v277_v31 = vadd.f32 %v276_v7, %v275_v16  ;;  %v293_v58 = vadd.f32 %v292_v49, %v291_v39 }
 0x28a   :  { %v294_v24 = vsel %vm95_vm0, %v262_v21, 0.0 }
 0x28b   :  { %v283_v26 = vrot.slane %v282_v23, 2  ;;  %v295_v27 = vrot.slane %v294_v24, 4  ;;  %v243_v28 = vpop.permute.xlu1 %242  ;;  %v278_v40 = vrot.slane %v277_v31, 1 }
 0x28c   :  { %v263_v4 = vmul.f32 %v243_v28, %v850_v12  ;;  %v271_v12 = vrot.slane %v270_v35, 1 }
 0x28d   :  { %v296_v32 = vadd.f32 %v295_v27, %v294_v24  ;;  %v284_v33 = vadd.f32 %v283_v26, %v282_v23  ;;  %v279_v50 = vadd.f32 %v278_v40, %v277_v31  ;;  %v574_v24 = vld [vmem:[%s947_s4] ss:$0 sm:$0xff] }
 0x28e   :  { %v301_v34 = vsel %vm95_vm0, %v263_v4, 0.0  ;;  %v272_v54 = vadd.f32 %v271_v12, %v270_v35 }
 0x28f   :  { %v297_v36 = vrot.slane %v296_v32, 2  ;;  %v302_v11 = vrot.slane %v301_v34, 4  ;;  %v250_v37 = vpop.permute.xlu1 %249  ;;  %v285_v42 = vrot.slane %v284_v33, 1  ;;  %644 = vtanh.f32 %v279_v50 }
 0x290   :  { %v264_v38 = vmul.f32 %v250_v37, %v858_v19 }
 0x291   :  { %v303_v41 = vadd.f32 %v302_v11, %v301_v34  ;;  %v298_v43 = vadd.f32 %v297_v36, %v296_v32  ;;  %v286_v52 = vadd.f32 %v285_v42, %v284_v33 }
 0x292   :  { %v308_v44 = vsel %vm95_vm0, %v264_v38, 0.0 }
 0x293   :  { %v304_v45 = vrot.slane %v303_v41, 2  ;;  %v309_v46 = vrot.slane %v308_v44, 4  ;;  %v257_v47 = vpop.permute.xlu1 %256  ;;  %v299_v53 = vrot.slane %v298_v43, 1  ;;  %646 = vtanh.f32 %v286_v52 }
 0x294   :  { %v265_v48 = vmul.f32 %v257_v47, %v860_v20  ;;  %648 = vtanh.f32 %v272_v54 }
 0x295   :  { %v305_v51 = vadd.f32 %v304_v45, %v303_v41  ;;  %v310_v30 = vadd.f32 %v309_v46, %v308_v44  ;;  %v300_v61 = vadd.f32 %v299_v53, %v298_v43  ;;  %650 = vtanh.f32 %v293_v58 }
 0x296   :  { %v315_v19 = vsel %vm95_vm0, %v265_v48, 0.0 }
 0x297   :  { %v306_v55 = vrot.slane %v305_v51, 1  ;;  %v311_v56 = vrot.slane %v310_v30, 2  ;;  %v316_v57 = vrot.slane %v315_v19, 4  ;;  %652 = vtanh.f32 %v300_v61 }
 0x299   :  { %v312_v59 = vadd.f32 %v311_v56, %v310_v30  ;;  %v317_v60 = vadd.f32 %v316_v57, %v315_v19  ;;  %v307_v20 = vadd.f32 %v306_v55, %v305_v51 }
 0x29b   :  { %v313_v62 = vrot.slane %v312_v59, 1  ;;  %v318_v63 = vrot.slane %v317_v60, 2  ;;  %654 = vtanh.f32 %v307_v20 }
 0x29c   :  { %v645_v6 = vpop.eup %644 }
 0x29d   :  { %v314_v0 = vadd.f32 %v313_v62, %v312_v59  ;;  %v319_v1 = vadd.f32 %v318_v63, %v317_v60 }
 0x29f   :  { %v320_v3 = vrot.slane %v319_v1, 1  ;;  %656 = vtanh.f32 %v314_v0 }
 0x2a0   :  { %v647_v9 = vpop.eup %646 }
 0x2a1   :  { %v321_v5 = vadd.f32 %v320_v3, %v319_v1  ;;  %v649_v10 = vpop.eup %648 }
 0x2a2   :  { %v462_v13 = vsel %vm171_vm1, %v645_v6, %v649_v10  ;;  %v651_v14 = vpop.eup %650 }
 0x2a3   :  { %658 = vtanh.f32 %v321_v5  ;;  %v463_v15 = vsel %vm173_vm2, %v647_v9, %v462_v13 }
 0x2a4   :  { %v653_v16 = vpop.eup %652  ;;  %v464_v8 = vsel %vm175_vm3, %v651_v14, %v463_v15 }
 0x2a5   :  { %v465_v18 = vsel %vm177_vm4, %v653_v16, %v464_v8 }
 0x2a8   :  { %v655_v2 = vpop.eup %654 }
 0x2a9   :  { %v466_v21 = vsel %vm179_vm5, %v655_v2, %v465_v18 }
 0x2ac   :  { %v657_v17 = vpop.eup %656 }
 0x2ad   :  { %v467_v7 = vsel %vm181_vm6, %v657_v17, %v466_v21 }
 0x2b0   :  { %v659_v22 = vpop.eup %658 }
 0x2b1   :  { %v468_v23 = vsel %vm183_vm8, %v659_v22, %v467_v7 }
 0x2b2   :  { %608 = vmatmul.mubr.msk.f32.vlgmr.msra.gmra.mxu1 %vm95_vm0, %v468_v23 }
 0x2d0   :  { %v439_v25 = vpop.f32.mrf.mxu0 }
 0x2d1   :  { %v440_v26 = vadd.f32 %v574_v24, %v439_v25 }
 0x2d2   :  { %v598_v27 = vpop.f32.mrf.mxu0 }
 0x2d3   :  { %541 = vst.msk [vmem:[#allocation8] sm:$0xff] %vm95_vm0, %v440_v26 }
 0x2d4   :  { %731 = shalt.err (!%p728_p5)
}
 0x2d5   :  { %552 = dma.vmem_to_hbm [thread:$0]  %s550_s24, 128, %s950_s7, [#allocation4]   ;;  %v576_v28 = vld [vmem:[%s949_s6] ss:$0 sm:$0xff] }
 0x2d6   :  { %s778_s29 = smov [#allocation9]  }
 0x2d7   :  { %s559_s30 = sshll.u32 %s778_s29, 4  ;;  %s560_s30 = int_to_ptr.vmem [resolvable:$true] %s559_s30 }
 0x2d8   :  { %s740_s9 = scalar_lea.vmem %s560_s30, 128  ;;  %p745_p7 = scmp.lt.s32.totalorder %s560_s30, %s560_s30 }
 0x2d9   :  { %p741_p6 = scmp.ne.s32.totalorder %s560_s30, %s740_s9  ;;  %p746_p8 = scmp.lt.s32.totalorder %s740_s9, %s740_s9 }
 0x2db   :  { %p747_p9 = por %p746_p8, %p745_p7 }
 0x2dd   :  { %p748_p10 = pnand %p747_p9, %p741_p6 }
 0x372   :  { %v537_v4 = vpop.f32.mrf.mxu1 }
 0x373   :  { %v538_v29 = vadd.f32 %v576_v28, %v537_v4 }
 0x374   :  { %v609_v31 = vpop.f32.mrf.mxu1 }
 0x375   :  { %542 = vst.msk [vmem:[#allocation9] sm:$0xff] %vm95_vm0, %v538_v29 }
 0x376   :  { %751 = shalt.err (!%p748_p10)
}
 0x377   :  { %562 = dma.vmem_to_hbm [thread:$0]  %s560_s30, 128, %s951_s8, [#allocation10]  }
 0x378   :  { %764 = dma.done.wait [#allocation4], 128  }
 0x379   :  { %765 = vsyncadd [#allocation4], 4294967168 }
 0x37a   :  { %766 = dma.done.wait [#allocation10], 128  }
 0x37b   :  { %767 = vsyncadd [#allocation10], 4294967168 }
 0x37c   :  { %569 = vsyncpa [#allocation3], 1 }
 0x37d   :  { %570 = vsyncpa [#allocation6], 1 }
 0x37e   :  { %571 = vsyncpa [#allocation4], 1 }
 0x37f   :  { %572 = vsyncpa [#allocation10], 1 }

</bundles_post_ra>
